<compile_context>
chip_gen: v5e
topology: v5e:2x2
jax: 0.10.0
libtpu: 0.0.40
codegen_flags: <defaults>
</compile_context>

<pallas_src>
import functools

import jax
import jax.numpy as jnp
from jax.experimental import pallas as pl
from jax.experimental.pallas import tpu as pltpu

LANE = 128          # lane width (last dim)
SUBLANE = 8         # sublane width (second-to-last dim)
DEFAULT_TILE_B = 512  # batch tile for the grid path (per review: >= 512)


def _round_up(n, m):
    return ((n + m - 1) // m) * m


def q_net_kernel(x_ref,
                 w1_ref, b1_ref,
                 w2_ref, b2_ref,
                 w3_ref, b3_ref,
                 w4_ref, b4_ref,
                 out_ref):
    """Fused 4-layer MLP on one (tile_rows, *) batch tile.

    Weights may be f32 or bf16; activations are cast to the weight dtype before
    each MXU dot and accumulated in f32.
    """
    wdt = w1_ref.dtype

    h = jnp.dot(x_ref[...].astype(wdt), w1_ref[...],
                preferred_element_type=jnp.float32) + b1_ref[...]
    h = jnp.maximum(h, 0.0)

    h = jnp.dot(h.astype(wdt), w2_ref[...],
                preferred_element_type=jnp.float32) + b2_ref[...]
    h = jnp.maximum(h, 0.0)

    h = jnp.dot(h.astype(wdt), w3_ref[...],
                preferred_element_type=jnp.float32) + b3_ref[...]
    h = jnp.maximum(h, 0.0)

    h = jnp.dot(h.astype(wdt), w4_ref[...],
                preferred_element_type=jnp.float32) + b4_ref[...]

    out_ref[...] = h.astype(out_ref.dtype)


def _pad2(a, rows, cols):
    return jnp.pad(a, ((0, rows - a.shape[0]), (0, cols - a.shape[1])))


def pad_q_net_params(params, weights_dtype=jnp.float32):
    """One-time padding of params to lane-dense shapes (call once, reuse).

    * w1 keeps its real contraction dim (state_dim) so x needs no lane pad.
    * All output dims are zero-padded to 128 lanes; hidden contraction dims of
      w2/w3/w4 are padded to 128 to match the padded activations.
    * Zero padding preserves semantics: padded hidden lanes get bias 0 ->
      ReLU(0)=0 -> hit zero weight rows in the next layer.
    * weights_dtype=bf16 is recommended on v6e/v7x (native MXU dtype, half the
      weight DMA); biases stay f32.
    """
    state_dim = params["w1"].shape[0]
    hidden_dim = params["w1"].shape[1]
    action_dim = params["w4"].shape[1]

    hd_p = _round_up(hidden_dim, LANE)
    ad_p = _round_up(action_dim, LANE)

    def w(a, rows, cols):
        return _pad2(a, rows, cols).astype(weights_dtype)

    return {
        "w1": w(params["w1"], state_dim, hd_p), "b1": _pad2(params["b1"], 1, hd_p),
        "w2": w(params["w2"], hd_p, hd_p),      "b2": _pad2(params["b2"], 1, hd_p),
        "w3": w(params["w3"], hd_p, hd_p),      "b3": _pad2(params["b3"], 1, hd_p),
        "w4": w(params["w4"], hd_p, ad_p),      "b4": _pad2(params["b4"], 1, ad_p),
    }


@functools.partial(jax.jit, static_argnames=("action_dim", "tile_b"))
def q_net_forward(x, padded_params, *, action_dim, tile_b=DEFAULT_TILE_B):
    """x: [batch, state_dim] float32, padded_params from pad_q_net_params.

    Returns [batch, action_dim] float32 (matches the PyTorch Q_Net forward).
    """
    batch, state_dim = x.shape
    p = padded_params
    assert p["w1"].shape[0] == state_dim, "padded params built for a different state_dim"
    ad_p = p["w4"].shape[1]
    w_args = (p["w1"], p["b1"], p["w2"], p["b2"], p["w3"], p["b3"], p["w4"], p["b4"])

    if batch <= tile_b:
        # Single tile: pad batch to a sublane multiple only, no grid at all.
        b_p = _round_up(batch, SUBLANE)
        x_p = x if b_p == batch else jnp.pad(x, ((0, b_p - batch), (0, 0)))

        out_p = pl.pallas_call(
            q_net_kernel,
            out_shape=jax.ShapeDtypeStruct((b_p, ad_p), jnp.float32),
            in_specs=[pl.BlockSpec(memory_space=pltpu.MemorySpace.VMEM)] * 9,
            out_specs=pl.BlockSpec(memory_space=pltpu.MemorySpace.VMEM),
        )(x_p, *w_args)
    else:
        # Batch-tiled path. Force an even tile count so the "parallel" axis
        # splits evenly across v7x's two TensorCores; re-derive tile_rows from
        # the batch so row padding stays small (e.g. 600 -> 2 tiles of 304).
        n_tiles = pl.cdiv(batch, tile_b)
        if n_tiles % 2:
            n_tiles += 1
        tile_rows = _round_up(pl.cdiv(batch, n_tiles), SUBLANE)
        b_p = tile_rows * n_tiles
        x_p = jnp.pad(x, ((0, b_p - batch), (0, 0)))

        # Constant index_maps -> weights/biases stay VMEM-resident across tiles
        # (no re-DMA after the first step).
        const = lambda a: pl.BlockSpec(a.shape, lambda i: (0, 0))

        out_p = pl.pallas_call(
            q_net_kernel,
            out_shape=jax.ShapeDtypeStruct((b_p, ad_p), jnp.float32),
            grid=(n_tiles,),
            in_specs=[pl.BlockSpec((tile_rows, state_dim), lambda i: (i, 0))]
                     + [const(a) for a in w_args],
            out_specs=pl.BlockSpec((tile_rows, ad_p), lambda i: (i, 0)),
            compiler_params=pltpu.CompilerParams(
                dimension_semantics=("parallel",)),
        )(x_p, *w_args)

    # Strip batch and action-lane padding outside the kernel.
    return out_p[:batch, :action_dim]


def init_q_net_params(key, state_dim, hidden_dim, action_dim):
    """Deterministic init mimicking nn.Linear's uniform(-1/sqrt(fan_in), ...).

    Weights stored transposed relative to PyTorch: shape [in, out].
    Biases stored as [1, out].
    """
    dims = [(state_dim, hidden_dim),
            (hidden_dim, hidden_dim),
            (hidden_dim, hidden_dim),
            (hidden_dim, action_dim)]
    params = {}
    for idx, (fan_in, fan_out) in enumerate(dims, start=1):
        key, kw, kb = jax.random.split(key, 3)
        bound = 1.0 / jnp.sqrt(jnp.float32(fan_in))
        params[f"w{idx}"] = jax.random.uniform(
            kw, (fan_in, fan_out), jnp.float32, minval=-bound, maxval=bound)
        params[f"b{idx}"] = jax.random.uniform(
            kb, (1, fan_out), jnp.float32, minval=-bound, maxval=bound)
    return params


def q_net_reference(x, params):
    """Pure-JAX reference for correctness check."""
    h = jnp.maximum(x @ params["w1"] + params["b1"], 0.0)
    h = jnp.maximum(h @ params["w2"] + params["b2"], 0.0)
    h = jnp.maximum(h @ params["w3"] + params["b3"], 0.0)
    return h @ params["w4"] + params["b4"]


if __name__ == "__main__":
    state_dim, hidden_dim, action_dim = 16, 32, 8
    batch = 2

    key = jax.random.PRNGKey(0)
    key, kx = jax.random.split(key)
    x = jax.random.normal(kx, (batch, state_dim), jnp.float32)

    params = init_q_net_params(key, state_dim, hidden_dim, action_dim)

    # Pad params ONCE; reuse the padded pytree across forwards.
    padded_f32 = pad_q_net_params(params)

    # Small-batch path (gridless, whole-array VMEM blocks).
    out = q_net_forward(x, padded_f32, action_dim=action_dim)
    out = jax.block_until_ready(out)
    ref = q_net_reference(x, params)
    assert out.shape == (batch, action_dim)
    assert jnp.allclose(out, ref, atol=1e-5, rtol=1e-5), "small-batch mismatch"

    # Large-batch path (even tile count over a parallel grid axis, resident weights).
    key, kb = jax.random.split(key)
    big_batch = 600
    xb = jax.random.normal(kb, (big_batch, state_dim), jnp.float32)
    out_b = jax.block_until_ready(
        q_net_forward(xb, padded_f32, action_dim=action_dim))
    ref_b = q_net_reference(xb, params)
    assert out_b.shape == (big_batch, action_dim)
    assert jnp.allclose(out_b, ref_b, atol=1e-5, rtol=1e-5), "tiled-batch mismatch"

    # bf16 weights (native MXU dtype on v6e/v7x); f32 accumulation, loose tol.
    padded_bf16 = pad_q_net_params(params, weights_dtype=jnp.bfloat16)
    out_bf = jax.block_until_ready(
        q_net_forward(xb, padded_bf16, action_dim=action_dim))
    assert out_bf.shape == (big_batch, action_dim)
    assert jnp.allclose(out_bf, ref_b, atol=5e-2, rtol=5e-2), "bf16-weight mismatch"

    print("KERNEL_OK")
</pallas_src>

<mosaic_0001>
module attributes {stable_mosaic.version = 11 : i64} {
  func.func @q_net_kernel(%arg0: memref<8x16xf32, #tpu.memory_space<vmem>>, %arg1: memref<16x128xf32, #tpu.memory_space<vmem>>, %arg2: memref<1x128xf32, #tpu.memory_space<vmem>>, %arg3: memref<128x128xf32, #tpu.memory_space<vmem>>, %arg4: memref<1x128xf32, #tpu.memory_space<vmem>>, %arg5: memref<128x128xf32, #tpu.memory_space<vmem>>, %arg6: memref<1x128xf32, #tpu.memory_space<vmem>>, %arg7: memref<128x128xf32, #tpu.memory_space<vmem>>, %arg8: memref<1x128xf32, #tpu.memory_space<vmem>>, %arg9: memref<8x128xf32, #tpu.memory_space<vmem>>) attributes {dimension_semantics = [], scalar_prefetch = 0 : i64, scratch_operands = 0 : i64, tpu.core_type = #tpu.core_type<tc>} {
    %c0 = arith.constant 0 : index
    %c0_0 = arith.constant 0 : index
    %0 = vector.load %arg0[%c0, %c0_0] : memref<8x16xf32, #tpu.memory_space<vmem>>, vector<8x16xf32>
    %c0_1 = arith.constant 0 : index
    %c0_2 = arith.constant 0 : index
    %1 = vector.load %arg1[%c0_1, %c0_2] : memref<16x128xf32, #tpu.memory_space<vmem>>, vector<16x128xf32>
    %cst = arith.constant dense<0.000000e+00> : vector<8x128xf32>
    %2 = tpu.matmul %0, %1, %cst {dimension_numbers = #tpu.dot_dimension_numbers<[1], [0], [0], [1], [0, 0, 1, 1], [], []>} : vector<8x16xf32>, vector<16x128xf32>, vector<8x128xf32> -> vector<8x128xf32>
    %c0_3 = arith.constant 0 : index
    %c0_4 = arith.constant 0 : index
    %3 = vector.load %arg2[%c0_3, %c0_4] : memref<1x128xf32, #tpu.memory_space<vmem>>, vector<1x128xf32>
    %4 = vector.broadcast %3 : vector<1x128xf32> to vector<8x128xf32>
    %5 = arith.addf %2, %4 : vector<8x128xf32>
    %cst_5 = arith.constant 0.000000e+00 : f32
    %6 = vector.broadcast %cst_5 : f32 to vector<8x128xf32>
    %7 = arith.maximumf %5, %6 : vector<8x128xf32>
    %c0_6 = arith.constant 0 : index
    %c0_7 = arith.constant 0 : index
    %8 = vector.load %arg3[%c0_6, %c0_7] : memref<128x128xf32, #tpu.memory_space<vmem>>, vector<128x128xf32>
    %cst_8 = arith.constant dense<0.000000e+00> : vector<8x128xf32>
    %9 = tpu.matmul %7, %8, %cst_8 {dimension_numbers = #tpu.dot_dimension_numbers<[1], [0], [0], [1], [0, 0, 1, 1], [], []>} : vector<8x128xf32>, vector<128x128xf32>, vector<8x128xf32> -> vector<8x128xf32>
    %c0_9 = arith.constant 0 : index
    %c0_10 = arith.constant 0 : index
    %10 = vector.load %arg4[%c0_9, %c0_10] : memref<1x128xf32, #tpu.memory_space<vmem>>, vector<1x128xf32>
    %11 = vector.broadcast %10 : vector<1x128xf32> to vector<8x128xf32>
    %12 = arith.addf %9, %11 : vector<8x128xf32>
    %cst_11 = arith.constant 0.000000e+00 : f32
    %13 = vector.broadcast %cst_11 : f32 to vector<8x128xf32>
    %14 = arith.maximumf %12, %13 : vector<8x128xf32>
    %c0_12 = arith.constant 0 : index
    %c0_13 = arith.constant 0 : index
    %15 = vector.load %arg5[%c0_12, %c0_13] : memref<128x128xf32, #tpu.memory_space<vmem>>, vector<128x128xf32>
    %cst_14 = arith.constant dense<0.000000e+00> : vector<8x128xf32>
    %16 = tpu.matmul %14, %15, %cst_14 {dimension_numbers = #tpu.dot_dimension_numbers<[1], [0], [0], [1], [0, 0, 1, 1], [], []>} : vector<8x128xf32>, vector<128x128xf32>, vector<8x128xf32> -> vector<8x128xf32>
    %c0_15 = arith.constant 0 : index
    %c0_16 = arith.constant 0 : index
    %17 = vector.load %arg6[%c0_15, %c0_16] : memref<1x128xf32, #tpu.memory_space<vmem>>, vector<1x128xf32>
    %18 = vector.broadcast %17 : vector<1x128xf32> to vector<8x128xf32>
    %19 = arith.addf %16, %18 : vector<8x128xf32>
    %cst_17 = arith.constant 0.000000e+00 : f32
    %20 = vector.broadcast %cst_17 : f32 to vector<8x128xf32>
    %21 = arith.maximumf %19, %20 : vector<8x128xf32>
    %c0_18 = arith.constant 0 : index
    %c0_19 = arith.constant 0 : index
    %22 = vector.load %arg7[%c0_18, %c0_19] : memref<128x128xf32, #tpu.memory_space<vmem>>, vector<128x128xf32>
    %cst_20 = arith.constant dense<0.000000e+00> : vector<8x128xf32>
    %23 = tpu.matmul %21, %22, %cst_20 {dimension_numbers = #tpu.dot_dimension_numbers<[1], [0], [0], [1], [0, 0, 1, 1], [], []>} : vector<8x128xf32>, vector<128x128xf32>, vector<8x128xf32> -> vector<8x128xf32>
    %c0_21 = arith.constant 0 : index
    %c0_22 = arith.constant 0 : index
    %24 = vector.load %arg8[%c0_21, %c0_22] : memref<1x128xf32, #tpu.memory_space<vmem>>, vector<1x128xf32>
    %25 = vector.broadcast %24 : vector<1x128xf32> to vector<8x128xf32>
    %26 = arith.addf %23, %25 : vector<8x128xf32>
    %c0_23 = arith.constant 0 : index
    %c0_24 = arith.constant 0 : index
    %27 = vector.load %arg9[%c0_23, %c0_24] : memref<8x128xf32, #tpu.memory_space<vmem>>, vector<8x128xf32>
    tpu.vector_store %arg9[%c0_23, %c0_24], %26 {strides = array<i32>} : memref<8x128xf32, #tpu.memory_space<vmem>>, vector<8x128xf32>,
    return
  }
}

</mosaic_0001>

<bundles_post_ra>
// kernel: q_net_forward.1
= control target key start
LH: loop header
LB: loop body
LE: loop exit
PB: predicated region body
PF: predicated region fallthrough
CT: control target
= control target key end

     0   :  { %14 = vsyncpa [#allocation3], 0  ;;  %s456_s0 = inlined_call_operand.vmem [shape: f32[8,16], index: 0, kind: input, shape index: {}]   ;;  %s457_s1 = inlined_call_operand.hbm [shape: f32[16,128], index: 1, kind: input, shape index: {}]   ;;  %s458_s2 = inlined_call_operand.vmem [shape: f32[1,128], index: 2, kind: input, shape index: {}]   ;;  %s459_s3 = inlined_call_operand.hbm [shape: f32[128,128], index: 3, kind: input, shape index: {}]   ;;  %s460_s4 = inlined_call_operand.vmem [shape: f32[1,128], index: 4, kind: input, shape index: {}]   ;;  %s461_s5 = inlined_call_operand.hbm [shape: f32[128,128], index: 5, kind: input, shape index: {}]   ;;  %s462_s6 = inlined_call_operand.vmem [shape: f32[1,128], index: 6, kind: input, shape index: {}]   ;;  %s463_s7 = inlined_call_operand.hbm [shape: f32[128,128], index: 7, kind: input, shape index: {}]   ;;  %s464_s8 = inlined_call_operand.vmem [shape: f32[1,128], index: 8, kind: input, shape index: {}]   ;;  %s465_s9 = inlined_call_operand.vmem [shape: f32[8,128], index: 9, kind: output, shape index: {}]  }
   0x1   :  { %15 = vsyncpa [#allocation5], 0 }
   0x2   :  { %16 = vsyncpa [#allocation8], 0  ;;  %s38_s11 = sshll.u32 %s459_s3, 4  ;;  %s370_s12 = smov [#allocation4]   ;;  %s39_s11 = int_to_ptr.hbm [resolvable:$true] %s38_s11 }
   0x3   :  { %s40_s13 = sshll.u32 %s370_s12, 4  ;;  %s23_s16 = sshll.u32 %s457_s1, 4  ;;  %s41_s13 = int_to_ptr.vmem [resolvable:$true] %s40_s13  ;;  %s24_s16 = int_to_ptr.hbm [resolvable:$true] %s23_s16 }
   0x4   :  { %s371_s17 = smov 128   ;;  %s372_s18 = smov 8  }
   0x5   :  { %46 = dma.hbm_to_vmem [thread:$0]  %s39_s11, 2048, %s41_s13, [#allocation5], %s371_s17, %s371_s17, %s372_s18  }
   0x6   :  { %s373_s19 = smov [#allocation2]   ;;  %s53_s23 = sshll.u32 %s461_s5, 4  ;;  %s54_s23 = int_to_ptr.hbm [resolvable:$true] %s53_s23 }
   0x7   :  { %s25_s20 = sshll.u32 %s373_s19, 4  ;;  %s68_s25 = sshll.u32 %s463_s7, 4  ;;  %s26_s20 = int_to_ptr.vmem [resolvable:$true] %s25_s20  ;;  %s69_s25 = int_to_ptr.hbm [resolvable:$true] %s68_s25 }
   0x8   :  { %31 = dma.hbm_to_vmem [thread:$0]  %s24_s16, 256, %s26_s20, [#allocation3], %s371_s17, %s371_s17, %s372_s18  }
   0x9   :  { %s374_s26 = smov [#allocation6]   ;;  %s375_s1 = smov [#allocation7]  }
   0xa   :  { %s55_s27 = sshll.u32 %s374_s26, 4  ;;  %s70_s28 = sshll.u32 %s375_s1, 4  ;;  %s56_s27 = int_to_ptr.vmem [resolvable:$true] %s55_s27  ;;  %s71_s28 = int_to_ptr.vmem [resolvable:$true] %s70_s28 }
   0xb   :  { %61 = dma.hbm_to_vmem [thread:$0]  %s54_s23, 2048, %s56_s27, [#allocation5], %s371_s17, %s371_s17, %s372_s18  }
   0xc   :  { %76 = dma.hbm_to_vmem [thread:$0]  %s69_s25, 2048, %s71_s28, [#allocation8], %s371_s17, %s371_s17, %s372_s18  }
   0xd   :  { %364 = dma.done.wait [#allocation3], 256  }
   0xe   :  { %365 = vsyncadd [#allocation3], 4294967040 }
   0xf   :  { %366 = dma.done.wait [#allocation5], 4096  }
  0x10   :  { %367 = vsyncadd [#allocation5], 4294963200 }
  0x11   :  { %368 = dma.done.wait [#allocation8], 2048  }
  0x12   :  { %369 = vsyncadd [#allocation8], 4294965248  ;;  %v97_v0 = vld [vmem:[#allocation2 + $0x8] sm:$0xff]  ;;  %v96_v1 = vld [vmem:[#allocation2] sm:$0xff]  ;;  %vm102_vm0 = vcmask 130048  }
  0x13   :  { %120 = vmatpush.msra.mxu0 %v97_v0  ;;  %v95_v2 = vld [vmem:[%s456_s0] sm:$0xff]  ;;  %v142_v3 = vld [vmem:[#allocation4 + $0x78] sm:$0xff]  ;;  %v140_v5 = vld [vmem:[#allocation4 + $0x68] sm:$0xff] }
  0x14   :  { %v141_v4 = vld [vmem:[#allocation4 + $0x70] sm:$0xff]  ;;  %147 = vmatpush.msra.mxu1 %v142_v3  ;;  %v139_v6 = vld [vmem:[#allocation4 + $0x60] sm:$0xff]  ;;  %v138_v7 = vld [vmem:[#allocation4 + $0x58] sm:$0xff] }
  0x15   :  { %121 = vmatpush.msra.mxu0 %v96_v1  ;;  %v137_v8 = vld [vmem:[#allocation4 + $0x50] sm:$0xff]  ;;  %v136_v9 = vld [vmem:[#allocation4 + $0x48] sm:$0xff]  ;;  %v135_v10 = vld [vmem:[#allocation4 + $0x40] sm:$0xff] }
  0x16   :  { %257 = vmatmul.msk.f32.vlgmr.msra.gmra.mxu0 %vm102_vm0, %v95_v2  ;;  %148 = vmatpush.msra.mxu1 %v141_v4  ;;  %v134_v11 = vld [vmem:[#allocation4 + $0x38] sm:$0xff]  ;;  %v133_v12 = vld [vmem:[#allocation4 + $0x30] sm:$0xff]  ;;  %v132_v13 = vld [vmem:[#allocation4 + $0x28] sm:$0xff] }
  0x17   :  { %v131_v14 = vld [vmem:[#allocation4 + $0x20] sm:$0xff]  ;;  %v130_v15 = vld [vmem:[#allocation4 + $0x18] sm:$0xff]  ;;  %v129_v16 = vld [vmem:[#allocation4 + $0x10] sm:$0xff] }
  0x18   :  { %149 = vmatpush.msra.mxu1 %v140_v5  ;;  %v128_v17 = vld [vmem:[#allocation4 + $0x8] sm:$0xff]  ;;  %v127_v18 = vld [vmem:[#allocation4] sm:$0xff]  ;;  %v183_v19 = vld [vmem:[#allocation6 + $0x78] sm:$0xff] }
  0x19   :  { %v182_v20 = vld [vmem:[#allocation6 + $0x70] sm:$0xff]  ;;  %188 = vmatpush.msra.mxu2 %v183_v19  ;;  %v181_v21 = vld [vmem:[#allocation6 + $0x68] sm:$0xff]  ;;  %v180_v22 = vld [vmem:[#allocation6 + $0x60] sm:$0xff] }
  0x1a   :  { %150 = vmatpush.msra.mxu1 %v139_v6  ;;  %v179_v23 = vld [vmem:[#allocation6 + $0x58] sm:$0xff]  ;;  %v178_v24 = vld [vmem:[#allocation6 + $0x50] sm:$0xff]  ;;  %v177_v25 = vld [vmem:[#allocation6 + $0x48] sm:$0xff] }
  0x1b   :  { %189 = vmatpush.msra.mxu2 %v182_v20  ;;  %v176_v26 = vld [vmem:[#allocation6 + $0x40] sm:$0xff]  ;;  %v175_v27 = vld [vmem:[#allocation6 + $0x38] sm:$0xff]  ;;  %v174_v28 = vld [vmem:[#allocation6 + $0x30] sm:$0xff] }
  0x1c   :  { %151 = vmatpush.msra.mxu1 %v138_v7  ;;  %v173_v29 = vld [vmem:[#allocation6 + $0x28] sm:$0xff]  ;;  %v172_v30 = vld [vmem:[#allocation6 + $0x20] sm:$0xff]  ;;  %v171_v31 = vld [vmem:[#allocation6 + $0x18] sm:$0xff] }
  0x1d   :  { %190 = vmatpush.msra.mxu2 %v181_v21  ;;  %v264_v32 = vld [vmem:[%s458_s2] ss:$0 sm:$0xff]  ;;  %v169_v37 = vld [vmem:[#allocation6 + $0x8] sm:$0xff]  ;;  %v168_v38 = vld [vmem:[#allocation6] sm:$0xff] }
  0x1e   :  { %152 = vmatpush.msra.mxu1 %v137_v8  ;;  %v170_v36 = vld [vmem:[#allocation6 + $0x10] sm:$0xff]  ;;  %v224_v39 = vld [vmem:[#allocation7 + $0x78] sm:$0xff]  ;;  %v222_v41 = vld [vmem:[#allocation7 + $0x68] sm:$0xff] }
  0x1f   :  { %191 = vmatpush.msra.mxu2 %v180_v22  ;;  %v223_v40 = vld [vmem:[#allocation7 + $0x70] sm:$0xff]  ;;  %229 = vmatpush.msra.mxu3 %v224_v39  ;;  %v221_v42 = vld [vmem:[#allocation7 + $0x60] sm:$0xff]  ;;  %v220_v43 = vld [vmem:[#allocation7 + $0x58] sm:$0xff] }
  0x20   :  { %153 = vmatpush.msra.mxu1 %v136_v9  ;;  %v219_v44 = vld [vmem:[#allocation7 + $0x50] sm:$0xff]  ;;  %v218_v45 = vld [vmem:[#allocation7 + $0x48] sm:$0xff]  ;;  %v217_v46 = vld [vmem:[#allocation7 + $0x40] sm:$0xff] }
  0x21   :  { %192 = vmatpush.msra.mxu2 %v179_v23  ;;  %230 = vmatpush.msra.mxu3 %v223_v40  ;;  %v216_v47 = vld [vmem:[#allocation7 + $0x38] sm:$0xff]  ;;  %v215_v48 = vld [vmem:[#allocation7 + $0x30] sm:$0xff]  ;;  %v214_v49 = vld [vmem:[#allocation7 + $0x28] sm:$0xff] }
  0x22   :  { %154 = vmatpush.msra.mxu1 %v135_v10  ;;  %v213_v50 = vld [vmem:[#allocation7 + $0x20] sm:$0xff]  ;;  %v212_v51 = vld [vmem:[#allocation7 + $0x18] sm:$0xff]  ;;  %v265_v52 = vld [vmem:[%s460_s4] ss:$0 sm:$0xff] }
  0x23   :  { %193 = vmatpush.msra.mxu2 %v178_v24  ;;  %231 = vmatpush.msra.mxu3 %v222_v41  ;;  %v211_v56 = vld [vmem:[#allocation7 + $0x10] sm:$0xff]  ;;  %v210_v57 = vld [vmem:[#allocation7 + $0x8] sm:$0xff]  ;;  %v209_v58 = vld [vmem:[#allocation7] sm:$0xff] }
  0x24   :  { %155 = vmatpush.msra.mxu1 %v134_v11  ;;  %v266_v59 = vld [vmem:[%s462_s6] ss:$0 sm:$0xff] }
  0x25   :  { %194 = vmatpush.msra.mxu2 %v177_v25  ;;  %232 = vmatpush.msra.mxu3 %v221_v42  ;;  %v267_v63 = vld [vmem:[%s464_s8] ss:$0 sm:$0xff] }
  0x26   :  { %156 = vmatpush.msra.mxu1 %v133_v12 }
  0x27   :  { %195 = vmatpush.msra.mxu2 %v176_v26  ;;  %233 = vmatpush.msra.mxu3 %v220_v43 }
  0x28   :  { %157 = vmatpush.msra.mxu1 %v132_v13 }
  0x29   :  { %196 = vmatpush.msra.mxu2 %v175_v27  ;;  %234 = vmatpush.msra.mxu3 %v219_v44 }
  0x2a   :  { %158 = vmatpush.msra.mxu1 %v131_v14 }
  0x2b   :  { %197 = vmatpush.msra.mxu2 %v174_v28  ;;  %235 = vmatpush.msra.mxu3 %v218_v45 }
  0x2c   :  { %159 = vmatpush.msra.mxu1 %v130_v15 }
  0x2d   :  { %198 = vmatpush.msra.mxu2 %v173_v29  ;;  %236 = vmatpush.msra.mxu3 %v217_v46 }
  0x2e   :  { %160 = vmatpush.msra.mxu1 %v129_v16 }
  0x2f   :  { %199 = vmatpush.msra.mxu2 %v172_v30  ;;  %237 = vmatpush.msra.mxu3 %v216_v47 }
  0x30   :  { %161 = vmatpush.msra.mxu1 %v128_v17 }
  0x31   :  { %200 = vmatpush.msra.mxu2 %v171_v31  ;;  %238 = vmatpush.msra.mxu3 %v215_v48 }
  0x32   :  { %162 = vmatpush.msra.mxu1 %v127_v18 }
  0x33   :  { %201 = vmatpush.msra.mxu2 %v170_v36  ;;  %239 = vmatpush.msra.mxu3 %v214_v49 }
  0x35   :  { %202 = vmatpush.msra.mxu2 %v169_v37  ;;  %240 = vmatpush.msra.mxu3 %v213_v50 }
  0x37   :  { %203 = vmatpush.msra.mxu2 %v168_v38  ;;  %241 = vmatpush.msra.mxu3 %v212_v51 }
  0x39   :  { %242 = vmatpush.msra.mxu3 %v211_v56 }
  0x3b   :  { %243 = vmatpush.msra.mxu3 %v210_v57 }
  0x3d   :  { %244 = vmatpush.msra.mxu3 %v209_v58 }
  0x93   :  { %v123_v33 = vpop.f32.mrf.mxu0 }
  0x94   :  { %v124_v34 = vadd.f32 %v264_v32, %v123_v33 }
  0x96   :  { %v126_v35 = vmax.f32 %v124_v34, 0.0 }
  0x98   :  { %163 = vmatmul.f32.vlgmr.msra.gmra.mxu1 %v126_v35 }
 0x115   :  { %v164_v53 = vpop.f32.mrf.mxu1 }
 0x116   :  { %v165_v54 = vadd.f32 %v265_v52, %v164_v53 }
 0x118   :  { %v167_v55 = vmax.f32 %v165_v54, 0.0 }
 0x11a   :  { %204 = vmatmul.f32.vlgmr.msra.gmra.mxu2 %v167_v55 }
 0x19d   :  { %v205_v60 = vpop.f32.mrf.mxu2 }
 0x19e   :  { %v206_v61 = vadd.f32 %v266_v59, %v205_v60 }
 0x1a0   :  { %v208_v62 = vmax.f32 %v206_v61, 0.0 }
 0x1a2   :  { %245 = vmatmul.f32.vlgmr.msra.gmra.mxu3 %v208_v62 }
 0x225   :  { %v246_v0 = vpop.f32.mrf.mxu3 }
 0x226   :  { %v247_v1 = vadd.f32 %v267_v63, %v246_v0 }
 0x228   :  { %249 = vst [vmem:[%s465_s9] sm:$0xff] %v247_v1 }
 0x229   :  { %254 = vsyncpa [#allocation3], 1 }
 0x22a   :  { %255 = vsyncpa [#allocation5], 1 }
 0x22b   :  { %256 = vsyncpa [#allocation8], 1 }

</bundles_post_ra>
